<compile_context>
chip_gen: v7x
topology: tpu7x:2x2x1
jax: 0.10.0
libtpu: 0.0.40
codegen_flags: <defaults>
</compile_context>

<pallas_src>
import jax
import jax.numpy as jnp
from jax import lax
from jax.experimental import pallas as pl
from jax.experimental.pallas import tpu as pltpu

IN_DIM = 9
HID_DIM = 40
OUT_DIM = 2

H_PAD = 128      # hidden width padded 40 -> 128 (lane-dense intermediates)
MAX_TB = 2048    # max batch-tile rows; a few MiB of VMEM at most


def _mlp_kernel(x_ref, w1_ref, b1_ref, w2_ref, b2_ref, w3t_ref, b3t_ref, o_ref):
    # fc1 + relu.  x stays f32, w1 is f32 (9x128, resident); K=9 is negligible MXU work
    # and Mosaic zero-pads the unaligned contraction dim internally.
    x = x_ref[...]                                                      # (tb, 9) f32
    h1 = jnp.dot(x, w1_ref[...], preferred_element_type=jnp.float32) + b1_ref[...]
    h1 = jnp.maximum(h1, 0.0).astype(jnp.bfloat16)                      # (tb, H_PAD)

    # fc2 + relu (bf16 operands, f32 accumulation on the MXU).
    h2 = jnp.dot(h1, w2_ref[...], preferred_element_type=jnp.float32) + b2_ref[...]
    h2 = jnp.maximum(h2, 0.0).astype(jnp.bfloat16)                      # (tb, H_PAD)

    # dropout1 / dropout2: identity in eval (inference) mode.
    # TODO(synk): training-mode dropout (pltpu.prng_random_bits mask) not emitted.

    # fc3 emitted transposed -> lane-dense (2, tb) logits: contract h2's lane dim
    # with w3^T's lane dim (A @ B^T form), so the whole epilogue is full-lane-width.
    logits_t = lax.dot_general(
        w3t_ref[...], h2,
        dimension_numbers=(((1,), (1,)), ((), ())),
        preferred_element_type=jnp.float32) + b3t_ref[...]              # (2, tb)

    # Exact 2-class softmax: p0 = sigmoid(l0 - l1), p1 = 1 - p0 (rows sum to 1).
    d = logits_t[0:1, :] - logits_t[1:2, :]                             # (1, tb)
    p0 = 1.0 / (1.0 + jnp.exp(-d))
    o_ref[0:1, :] = p0
    o_ref[1:2, :] = 1.0 - p0


def _round_up(n, m):
    return ((n + m - 1) // m) * m


def _pad2(a, rows, cols, dtype):
    out = jnp.zeros((rows, cols), dtype)
    return out.at[: a.shape[0], : a.shape[1]].set(a.astype(dtype))


def prepare_params(params):
    """One-time pad/cast of the weights.  Call once and reuse (keeps the per-call
    path free of pad/cast XLA launches)."""
    w1, b1, w2, b2, w3, b3 = params
    w1_p = _pad2(w1, IN_DIM, H_PAD, jnp.float32)          # (9, 128)   f32
    w2_p = _pad2(w2, H_PAD, H_PAD, jnp.bfloat16)          # (128, 128) bf16
    w3t_p = _pad2(w3.T, OUT_DIM, H_PAD, jnp.bfloat16)     # (2, 128)   bf16 (transposed)
    b1_p = _pad2(b1[None, :], 1, H_PAD, jnp.float32)      # (1, 128)
    b2_p = _pad2(b2[None, :], 1, H_PAD, jnp.float32)      # (1, 128)
    b3t_p = b3.astype(jnp.float32).reshape(OUT_DIM, 1)    # (2, 1)
    return (w1_p, b1_p, w2_p, b2_p, w3t_p, b3t_p)


def _choose_tb(batch):
    # Single grid step when the whole batch fits one tile (v5e/v6e: one TC, the grid
    # is a serial loop, so extra steps only add ~0.35 us each).  For B > MAX_TB the
    # grid splits into MAX_TB-row "parallel" steps, which v7x shards over its 2 TCs.
    return min(MAX_TB, _round_up(max(batch, 1), 8))


def mymodule1_forward(x, prepared_params):
    """x: (B, 9) float32.  prepared_params: output of prepare_params().
    Returns (B, 2) float32 softmax probabilities (eval-mode dropout = identity)."""
    w1_p, b1_p, w2_p, b2_p, w3t_p, b3t_p = prepared_params
    B = x.shape[0]

    tb = _choose_tb(B)
    Bp = _round_up(B, tb)
    if Bp != B:  # only when B is not a multiple of 8 (or of the 2048-row tile)
        x = jnp.zeros((Bp, IN_DIM), x.dtype).at[:B].set(x)

    const = lambda r, c: pl.BlockSpec((r, c), lambda i: (0, 0))  # resident operands

    out_t = pl.pallas_call(
        _mlp_kernel,
        out_shape=jax.ShapeDtypeStruct((OUT_DIM, Bp), jnp.float32),
        grid_spec=pltpu.PrefetchScalarGridSpec(
            num_scalar_prefetch=0,
            grid=(Bp // tb,),
            in_specs=[
                pl.BlockSpec((tb, IN_DIM), lambda i: (i, 0)),   # x tile, raw 9-wide f32
                const(IN_DIM, H_PAD), const(1, H_PAD),          # w1, b1
                const(H_PAD, H_PAD), const(1, H_PAD),           # w2, b2
                const(OUT_DIM, H_PAD), const(OUT_DIM, 1),       # w3^T, b3^T
            ],
            out_specs=pl.BlockSpec((OUT_DIM, tb), lambda i: (0, i)),  # lane-dense (2, tb)
        ),
        compiler_params=pltpu.CompilerParams(
            dimension_semantics=("parallel",),
            vmem_limit_bytes=32 * 1024 * 1024),
    )(x, w1_p, b1_p, w2_p, b2_p, w3t_p, b3t_p)

    probs_t = out_t if Bp == B else out_t[:, :B]
    return probs_t.T  # (B, 2)


def init_params(key):
    """Deterministic init matching PyTorch nn.Linear default (U(-1/sqrt(fan_in), +))."""
    ks = jax.random.split(key, 6)

    def linear(kw, kb, fan_in, fan_out):
        bound = 1.0 / jnp.sqrt(jnp.float32(fan_in))
        # stored as (fan_in, fan_out) so the kernel computes x @ W + b
        w = jax.random.uniform(kw, (fan_in, fan_out), jnp.float32, -bound, bound)
        b = jax.random.uniform(kb, (fan_out,), jnp.float32, -bound, bound)
        return w, b

    w1, b1 = linear(ks[0], ks[1], IN_DIM, HID_DIM)
    w2, b2 = linear(ks[2], ks[3], HID_DIM, HID_DIM)
    w3, b3 = linear(ks[4], ks[5], HID_DIM, OUT_DIM)
    return (w1, b1, w2, b2, w3, b3)


def _reference_forward(x, params):
    w1, b1, w2, b2, w3, b3 = params
    h = jnp.maximum(x @ w1 + b1, 0.0)
    h = jnp.maximum(h @ w2 + b2, 0.0)
    return jax.nn.softmax(h @ w3 + b3, axis=-1)


if __name__ == "__main__":
    key = jax.random.PRNGKey(0)
    k_x, k_p = jax.random.split(key)

    B = 64
    x = jax.random.normal(k_x, (B, IN_DIM), jnp.float32)
    params = init_params(k_p)
    prepared = prepare_params(params)          # one-time pad/cast, outside hot path

    fwd = jax.jit(mymodule1_forward)
    out = jax.block_until_ready(fwd(x, prepared))

    assert out.shape == (B, OUT_DIM)
    # sigmoid-form 2-class softmax is exactly normalized (up to f32 rounding)
    assert bool(jnp.allclose(jnp.sum(out, axis=-1), 1.0, atol=1e-5))
    # matches the f32 reference within bf16 operand precision (fc2/fc3 in bf16)
    ref = _reference_forward(x, params)
    assert bool(jnp.allclose(out, ref, atol=2e-2))

    print("KERNEL_OK")
</pallas_src>

<mosaic_0001>
module attributes {stable_mosaic.version = 11 : i64} {
  func.func @_mlp_kernel(%arg0: i32, %arg1: memref<64x9xf32, #tpu.memory_space<vmem>>, %arg2: memref<9x128xf32, #tpu.memory_space<vmem>>, %arg3: memref<1x128xf32, #tpu.memory_space<vmem>>, %arg4: memref<128x128xbf16, #tpu.memory_space<vmem>>, %arg5: memref<1x128xf32, #tpu.memory_space<vmem>>, %arg6: memref<2x128xbf16, #tpu.memory_space<vmem>>, %arg7: memref<2x1xf32, #tpu.memory_space<vmem>>, %arg8: memref<2x64xf32, #tpu.memory_space<vmem>>) attributes {dimension_semantics = [#tpu.dimension_semantics<parallel>], iteration_bounds = array<i64: 1>, scalar_prefetch = 0 : i64, scratch_operands = 0 : i64, tpu.core_type = #tpu.core_type<tc>, window_params = [{transform_indices = @transform_0, window_bounds = array<i64: 64, 9>}, {pipeline_mode = #tpu.pipeline_mode<synchronous>, transform_indices = @transform_1, window_bounds = array<i64: 9, 128>}, {pipeline_mode = #tpu.pipeline_mode<synchronous>, transform_indices = @transform_2, window_bounds = array<i64: 1, 128>}, {pipeline_mode = #tpu.pipeline_mode<synchronous>, transform_indices = @transform_3, window_bounds = array<i64: 128, 128>}, {pipeline_mode = #tpu.pipeline_mode<synchronous>, transform_indices = @transform_4, window_bounds = array<i64: 1, 128>}, {pipeline_mode = #tpu.pipeline_mode<synchronous>, transform_indices = @transform_5, window_bounds = array<i64: 2, 128>}, {pipeline_mode = #tpu.pipeline_mode<synchronous>, transform_indices = @transform_6, window_bounds = array<i64: 2, 1>}, {transform_indices = @transform_7, window_bounds = array<i64: 2, 64>}]} {
    %c0 = arith.constant 0 : index
    %c0_0 = arith.constant 0 : index
    %0 = vector.load %arg1[%c0, %c0_0] : memref<64x9xf32, #tpu.memory_space<vmem>>, vector<64x9xf32>
    %c0_1 = arith.constant 0 : index
    %c0_2 = arith.constant 0 : index
    %1 = vector.load %arg2[%c0_1, %c0_2] : memref<9x128xf32, #tpu.memory_space<vmem>>, vector<9x128xf32>
    %cst = arith.constant dense<0.000000e+00> : vector<64x128xf32>
    %2 = tpu.matmul %0, %1, %cst {dimension_numbers = #tpu.dot_dimension_numbers<[1], [0], [0], [1], [0, 0, 1, 1], [], []>} : vector<64x9xf32>, vector<9x128xf32>, vector<64x128xf32> -> vector<64x128xf32>
    %c0_3 = arith.constant 0 : index
    %c0_4 = arith.constant 0 : index
    %3 = vector.load %arg3[%c0_3, %c0_4] : memref<1x128xf32, #tpu.memory_space<vmem>>, vector<1x128xf32>
    %4 = vector.broadcast %3 : vector<1x128xf32> to vector<64x128xf32>
    %5 = arith.addf %2, %4 : vector<64x128xf32>
    %cst_5 = arith.constant 0.000000e+00 : f32
    %6 = vector.broadcast %cst_5 : f32 to vector<64x128xf32>
    %7 = arith.maximumf %5, %6 : vector<64x128xf32>
    %8 = arith.truncf %7 : vector<64x128xf32> to vector<64x128xbf16>
    %c0_6 = arith.constant 0 : index
    %c0_7 = arith.constant 0 : index
    %9 = vector.load %arg4[%c0_6, %c0_7] : memref<128x128xbf16, #tpu.memory_space<vmem>>, vector<128x128xbf16>
    %cst_8 = arith.constant dense<0.000000e+00> : vector<64x128xf32>
    %10 = tpu.matmul %8, %9, %cst_8 {dimension_numbers = #tpu.dot_dimension_numbers<[1], [0], [0], [1], [0, 0, 1, 1], [], []>} : vector<64x128xbf16>, vector<128x128xbf16>, vector<64x128xf32> -> vector<64x128xf32>
    %c0_9 = arith.constant 0 : index
    %c0_10 = arith.constant 0 : index
    %11 = vector.load %arg5[%c0_9, %c0_10] : memref<1x128xf32, #tpu.memory_space<vmem>>, vector<1x128xf32>
    %12 = vector.broadcast %11 : vector<1x128xf32> to vector<64x128xf32>
    %13 = arith.addf %10, %12 : vector<64x128xf32>
    %cst_11 = arith.constant 0.000000e+00 : f32
    %14 = vector.broadcast %cst_11 : f32 to vector<64x128xf32>
    %15 = arith.maximumf %13, %14 : vector<64x128xf32>
    %16 = arith.truncf %15 : vector<64x128xf32> to vector<64x128xbf16>
    %c0_12 = arith.constant 0 : index
    %c0_13 = arith.constant 0 : index
    %17 = vector.load %arg6[%c0_12, %c0_13] : memref<2x128xbf16, #tpu.memory_space<vmem>>, vector<2x128xbf16>
    %cst_14 = arith.constant dense<0.000000e+00> : vector<2x64xf32>
    %18 = tpu.matmul %17, %16, %cst_14 {dimension_numbers = #tpu.dot_dimension_numbers<[1], [1], [0], [0], [0, 0, 1, 0], [], []>} : vector<2x128xbf16>, vector<64x128xbf16>, vector<2x64xf32> -> vector<2x64xf32>
    %c0_15 = arith.constant 0 : index
    %c0_16 = arith.constant 0 : index
    %19 = vector.load %arg7[%c0_15, %c0_16] : memref<2x1xf32, #tpu.memory_space<vmem>>, vector<2x1xf32>
    %20 = vector.broadcast %19 : vector<2x1xf32> to vector<2x64xf32>
    %21 = arith.addf %18, %20 : vector<2x64xf32>
    %22 = vector.extract_strided_slice %21 {offsets = [0, 0], sizes = [1, 64], strides = [1, 1]} : vector<2x64xf32> to vector<1x64xf32>
    %23 = vector.extract_strided_slice %21 {offsets = [1, 0], sizes = [1, 64], strides = [1, 1]} : vector<2x64xf32> to vector<1x64xf32>
    %24 = arith.subf %22, %23 : vector<1x64xf32>
    %cst_17 = arith.constant 0.000000e+00 : f32
    %25 = vector.broadcast %cst_17 : f32 to vector<1x64xf32>
    %26 = arith.subf %25, %24 : vector<1x64xf32>
    %27 = math.exp %26 : vector<1x64xf32>
    %cst_18 = arith.constant 1.000000e+00 : f32
    %28 = vector.broadcast %cst_18 : f32 to vector<1x64xf32>
    %29 = arith.addf %28, %27 : vector<1x64xf32>
    %cst_19 = arith.constant 1.000000e+00 : f32
    %30 = vector.broadcast %cst_19 : f32 to vector<1x64xf32>
    %31 = arith.divf %30, %29 : vector<1x64xf32>
    %c0_20 = arith.constant 0 : index
    %c0_21 = arith.constant 0 : index
    %32 = vector.load %arg8[%c0_20, %c0_21] : memref<2x64xf32, #tpu.memory_space<vmem>>, vector<1x64xf32>
    tpu.vector_store %arg8[%c0_20, %c0_21], %31 {strides = array<i32>} : memref<2x64xf32, #tpu.memory_space<vmem>>, vector<1x64xf32>,
    %cst_22 = arith.constant 1.000000e+00 : f32
    %33 = vector.broadcast %cst_22 : f32 to vector<1x64xf32>
    %34 = arith.subf %33, %31 : vector<1x64xf32>
    %c1 = arith.constant 1 : index
    %c0_23 = arith.constant 0 : index
    %35 = vector.load %arg8[%c1, %c0_23] : memref<2x64xf32, #tpu.memory_space<vmem>>, vector<1x64xf32>
    tpu.vector_store %arg8[%c1, %c0_23], %34 {strides = array<i32>} : memref<2x64xf32, #tpu.memory_space<vmem>>, vector<1x64xf32>,
    return
  }
  func.func @transform_0(%arg0: i32) -> (i32, i32) {
    %c0_i32 = arith.constant 0 : i32
    %c0_i32_0 = arith.constant 0 : i32
    return %arg0, %c0_i32 : i32, i32
  }
  func.func @transform_1(%arg0: i32) -> (i32, i32) {
    %c0_i32 = arith.constant 0 : i32
    %c0_i32_0 = arith.constant 0 : i32
    %c0_i32_1 = arith.constant 0 : i32
    return %c0_i32, %c0_i32_0 : i32, i32
  }
  func.func @transform_2(%arg0: i32) -> (i32, i32) {
    %c0_i32 = arith.constant 0 : i32
    %c0_i32_0 = arith.constant 0 : i32
    %c0_i32_1 = arith.constant 0 : i32
    return %c0_i32, %c0_i32_0 : i32, i32
  }
  func.func @transform_3(%arg0: i32) -> (i32, i32) {
    %c0_i32 = arith.constant 0 : i32
    %c0_i32_0 = arith.constant 0 : i32
    %c0_i32_1 = arith.constant 0 : i32
    return %c0_i32, %c0_i32_0 : i32, i32
  }
  func.func @transform_4(%arg0: i32) -> (i32, i32) {
    %c0_i32 = arith.constant 0 : i32
    %c0_i32_0 = arith.constant 0 : i32
    %c0_i32_1 = arith.constant 0 : i32
    return %c0_i32, %c0_i32_0 : i32, i32
  }
  func.func @transform_5(%arg0: i32) -> (i32, i32) {
    %c0_i32 = arith.constant 0 : i32
    %c0_i32_0 = arith.constant 0 : i32
    %c0_i32_1 = arith.constant 0 : i32
    return %c0_i32, %c0_i32_0 : i32, i32
  }
  func.func @transform_6(%arg0: i32) -> (i32, i32) {
    %c0_i32 = arith.constant 0 : i32
    %c0_i32_0 = arith.constant 0 : i32
    %c0_i32_1 = arith.constant 0 : i32
    return %c0_i32, %c0_i32_0 : i32, i32
  }
  func.func @transform_7(%arg0: i32) -> (i32, i32) {
    %c0_i32 = arith.constant 0 : i32
    %c0_i32_0 = arith.constant 0 : i32
    return %c0_i32, %arg0 : i32, i32
  }
}

</mosaic_0001>

<bundles_post_ra>
// kernel: mymodule1_forward.1
= control target key start
LH: loop header
LB: loop body
LE: loop exit
PB: predicated region body
PF: predicated region fallthrough
CT: control target
= control target key end

     0   :  { %vm70_vm0 = vcmask 1040384   ;;  %vm560_vm1 = vmmov 1   ;;  %vm45_vm3 = vcmask 72704   ;;  %s691_s0 = inlined_call_operand.vmem [shape: f32[64,9], index: 0, kind: input, shape index: {}]   ;;  %s692_s1 = inlined_call_operand.vmem [shape: f32[9,128], index: 1, kind: input, shape index: {}]   ;;  %s693_s2 = inlined_call_operand.vmem [shape: f32[1,128], index: 2, kind: input, shape index: {}]   ;;  %s694_s3 = inlined_call_operand.vmem [shape: bf16[128,128], index: 3, kind: input, shape index: {}]   ;;  %s695_s4 = inlined_call_operand.vmem [shape: f32[1,128], index: 4, kind: input, shape index: {}]   ;;  %s696_s5 = inlined_call_operand.vmem [shape: bf16[2,128], index: 5, kind: input, shape index: {}]   ;;  %s697_s6 = inlined_call_operand.vmem [shape: f32[2,1], index: 6, kind: input, shape index: {}]   ;;  %s698_s7 = inlined_call_operand.hbm [shape: f32[2,64], index: 7, kind: output, shape index: {}]  }
   0x1   :  { %v36_v0 = vld [vmem:[%s692_s1] sm:$0xff]  ;;  %v37_v1 = vld [vmem:[%s692_s1 + $0x8] sm:$0x1]  ;;  %vm513_vm2 = vmpackc.low %vm70_vm0, %vm560_vm1 }
   0x2   :  { %v28_v2 = vld [vmem:[%s691_s0] sm:$0xff]  ;;  %v512_v3 = vpack.c.bf16 %v37_v1, %v36_v0  ;;  %v29_v4 = vld [vmem:[%s691_s0 + $0x8] sm:$0xff]  ;;  %v30_v5 = vld [vmem:[%s691_s0 + $0x10] sm:$0xff] }
   0x3   :  { %464 = vmatprep.mubr.msk.f32.mxu0 %vm45_vm3, %v28_v2  ;;  %v524_v6 = vld [vmem:[%s694_s3] sm:$0xff]   ;;  %v525_v7 = vld [vmem:[%s694_s3 + $0x8] sm:$0xff]   ;;  %v31_v8 = vld [vmem:[%s691_s0 + $0x18] sm:$0xff] }
   0x4   :  { %514 = vmatprep.subr.msk.bf16.mxu0 %vm513_vm2, %v512_v3  ;;  %476 = vmatprep.subr.bf16.mxu1 %v524_v6  ;;  %v32_v9 = vld [vmem:[%s691_s0 + $0x20] sm:$0xff]  ;;  %v526_v10 = vld [vmem:[%s694_s3 + $0x10] sm:$0xff]  }
   0x5   :  { %517 = vmatpush3.bf16.msk.msra.mxu0 %vm513_vm2, %v512_v3  ;;  %477 = vmatpush3.bf16.msra.mxu1 %v524_v6 }
   0x6   :  { %478 = vmatprep.subr.bf16.mxu1 %v525_v7 }
   0x8   :  { %465 = vmatmul.mubr.msk.f32.vlgmr.msra.gmra.mrb[0].mxu0 %vm45_vm3, %v29_v4 }
   0x9   :  { %467 = vmatprep.mubr.msk.f32.mxu0 %vm45_vm3, %v30_v5 }
   0xa   :  { %12 = vsyncpa [#allocation3], 0  ;;  %479 = vmatpush3.bf16.msra.mxu1 %v525_v7  ;;  %v33_v11 = vld [vmem:[%s691_s0 + $0x28] sm:$0xff]  ;;  %v527_v12 = vld [vmem:[%s694_s3 + $0x18] sm:$0xff]   ;;  %v561_v48 = vmov 0.0   ;;  %vm562_vm4 = vmmov 0  }
   0xb   :  { %480 = vmatprep.subr.bf16.mxu1 %v526_v10  ;;  %v34_v13 = vld [vmem:[%s691_s0 + $0x30] sm:$0xff]  ;;  %v35_v14 = vld [vmem:[%s691_s0 + $0x38] sm:$0xff]  ;;  %v528_v15 = vld [vmem:[%s694_s3 + $0x20] sm:$0xff]   ;;  %500 = vmatprep.subr.bf16.mxu0 %v561_v48  ;;  %v563_v50 = vmov 0   ;;  %vm396_vm5 = vcmask 516096   ;;  %s564_s15 = smov [#allocation2]  }
   0xc   :  { %468 = vmatmul.mubr.msk.f32.gmra.mrb[2].mxu0 %vm45_vm3, %v31_v8  ;;  %v529_v16 = vld [vmem:[%s694_s3 + $0x28] sm:$0xff]   ;;  %v530_v17 = vld [vmem:[%s694_s3 + $0x30] sm:$0xff]   ;;  %v531_v18 = vld [vmem:[%s694_s3 + $0x38] sm:$0xff]   ;;  %523 = vset.pattern.permute.xlu0 %v563_v50  ;;  %s406_s16 = sshll.u32 %s564_s15, 4  ;;  %s407_s16 = int_to_ptr.vmem [resolvable:$true] %s406_s16 }
   0xd   :  { %470 = vmatprep.mubr.msk.f32.mxu0 %vm45_vm3, %v32_v9  ;;  %v414_v19 = vld [vmem:[%s693_s2] ss:$0 sm:$0xff]  ;;  %p541_p1 = scmp.lt.s32.totalorder %s407_s16, %s407_s16 }
   0xe   :  { %481 = vmatpush3.bf16.msra.mxu1 %v526_v10  ;;  %v340_v49 = vld [vmem:[%s697_s6] sm:$0x3] }
   0xf   :  { %482 = vmatprep.subr.bf16.mxu1 %v527_v12  ;;  %343 = vperm.xlu0 %523, %v340_v49   ;;  %v424_v51 = vld [vmem:[%s695_s4] ss:$0 sm:$0xff] }
  0x10   :  { %471 = vmatmul.mubr.msk.f32.gmra.mrb[4].mxu0 %vm45_vm3, %v33_v11 }
  0x11   :  { %473 = vmatprep.mubr.msk.f32.mxu0 %vm45_vm3, %v34_v13 }
  0x12   :  { %483 = vmatpush3.bf16.msra.mxu1 %v527_v12 }
  0x13   :  { %484 = vmatprep.subr.bf16.mxu1 %v528_v15 }
  0x14   :  { %474 = vmatmul.mubr.msk.f32.gmra.mrb[6].mxu0 %vm45_vm3, %v35_v14 }
  0x15   :  { %508 = vmatprep.mubr.msk.bf16.mxu0 %vm562_vm4, %v561_v48 }
  0x16   :  { %485 = vmatpush3.bf16.msra.mxu1 %v528_v15 }
  0x17   :  { %486 = vmatprep.subr.bf16.mxu1 %v529_v16 }
  0x1a   :  { %487 = vmatpush3.bf16.msra.mxu1 %v529_v16  ;;  %v339_v16 = vld [vmem:[%s696_s5] sm:$0x1]  ;;  %s536_s5 = scalar_lea.vmem %s407_s16, 32 }
  0x1b   :  { %488 = vmatprep.subr.bf16.mxu1 %v530_v17  ;;  %p537_p0 = scmp.ne.s32.totalorder %s407_s16, %s536_s5  ;;  %p542_p2 = scmp.lt.s32.totalorder %s536_s5, %s536_s5 }
  0x1d   :  { %p543_p3 = por %p542_p2, %p541_p1 }
  0x1e   :  { %489 = vmatpush3.bf16.msra.mxu1 %v530_v17 }
  0x1f   :  { %490 = vmatprep.subr.bf16.mxu1 %v531_v18  ;;  %p544_p4 = pnand %p543_p3, %p537_p0 }
  0x22   :  { %491 = vmatpush3.bf16.msra.mxu1 %v531_v18 }
  0x8e   :  { %v344_v17 = vpop.permute.xlu0 %343 }
  0xdb   :  { %v466_v20 = vpop.f32.mrb[0].mxu0 }
  0xdc   :  { %v146_v21 = vadd.f32 %v466_v20, %v414_v19  ;;  %v140_v22 = vpop.f32.mrb[1].mxu0 }
  0xdd   :  { %v141_v23 = vadd.f32 %v414_v19, %v140_v22 }
  0xde   :  { %v180_v24 = vmax.f32 %v146_v21, 0.0 }
  0xdf   :  { %v179_v25 = vmax.f32 %v141_v23, 0.0  ;;  %v469_v26 = vpop.f32.mrb[2].mxu0 }
  0xe0   :  { %v156_v27 = vadd.f32 %v469_v26, %v414_v19  ;;  %v150_v28 = vpop.f32.mrb[3].mxu0 }
  0xe1   :  { %v151_v29 = vadd.f32 %v414_v19, %v150_v28  ;;  %v187_v30 = vpack.c.bf16 %v180_v24, %v179_v25 }
  0xe2   :  { %v182_v31 = vmax.f32 %v156_v27, 0.0 }
  0xe3   :  { %v181_v32 = vmax.f32 %v151_v29, 0.0  ;;  %492 = vmatprep.mubr.bf16.mxu1 %v187_v30  ;;  %v472_v33 = vpop.f32.mrb[4].mxu0 }
  0xe4   :  { %v166_v34 = vadd.f32 %v472_v33, %v414_v19  ;;  %v160_v35 = vpop.f32.mrb[5].mxu0 }
  0xe5   :  { %v188_v36 = vpack.c.bf16 %v182_v31, %v181_v32  ;;  %v161_v37 = vadd.f32 %v414_v19, %v160_v35 }
  0xe6   :  { %v184_v38 = vmax.f32 %v166_v34, 0.0 }
  0xe7   :  { %493 = vmatmul.mubr.bf16.vlgmr.msra.gmra.mrb[0].mxu1 %v188_v36  ;;  %v183_v39 = vmax.f32 %v161_v37, 0.0  ;;  %v475_v40 = vpop.f32.mrb[6].mxu0 }
  0xe8   :  { %v176_v41 = vadd.f32 %v475_v40, %v414_v19  ;;  %v170_v42 = vpop.f32.mrb[7].mxu0 }
  0xe9   :  { %v189_v43 = vpack.c.bf16 %v184_v38, %v183_v39  ;;  %v171_v44 = vadd.f32 %v414_v19, %v170_v42 }
  0xea   :  { %v186_v45 = vmax.f32 %v176_v41, 0.0 }
  0xeb   :  { %v185_v46 = vmax.f32 %v171_v44, 0.0  ;;  %496 = vmatprep.mubr.bf16.mxu1 %v189_v43 }
  0xed   :  { %v190_v47 = vpack.c.bf16 %v186_v45, %v185_v46 }
  0xef   :  { %497 = vmatmul.mubr.bf16.gmra.mrb[4].mxu1 %v190_v47 }
 0x1ba   :  { %v494_v52 = vpop.f32.mrb[0].mxu1 }
 0x1bb   :  { %v305_v53 = vadd.f32 %v494_v52, %v424_v51  ;;  %v296_v54 = vpop.f32.mrb[1].mxu1 }
 0x1bc   :  { %v297_v55 = vadd.f32 %v424_v51, %v296_v54  ;;  %v495_v56 = vpop.f32.mrb[2].mxu1 }
 0x1bd   :  { %v308_v57 = vadd.f32 %v495_v56, %v424_v51  ;;  %v299_v58 = vpop.f32.mrb[3].mxu1  ;;  %v329_v60 = vmax.f32 %v305_v53, 0.0 }
 0x1be   :  { %v300_v59 = vadd.f32 %v424_v51, %v299_v58  ;;  %v327_v62 = vmax.f32 %v297_v55, 0.0 }
 0x1bf   :  { %v330_v61 = vmax.f32 %v308_v57, 0.0 }
 0x1c0   :  { %v328_v63 = vmax.f32 %v300_v59, 0.0 }
 0x1c1   :  { %v336_v0 = vpack.c.bf16 %v330_v61, %v329_v60 }
 0x1c2   :  { %v335_v1 = vpack.c.bf16 %v328_v63, %v327_v62  ;;  %v498_v2 = vpop.f32.mrb[4].mxu1 }
 0x1c3   :  { %v321_v3 = vadd.f32 %v498_v2, %v424_v51  ;;  %v312_v4 = vpop.f32.mrb[5].mxu1 }
 0x1c4   :  { %501 = vmatpush3.bf16.xpose.msra.mxu0 %v335_v1  ;;  %v313_v5 = vadd.f32 %v424_v51, %v312_v4  ;;  %v499_v6 = vpop.f32.mrb[6].mxu1 }
 0x1c5   :  { %v333_v7 = vmax.f32 %v321_v3, 0.0  ;;  %v324_v8 = vadd.f32 %v499_v6, %v424_v51  ;;  %v315_v9 = vpop.f32.mrb[7].mxu1  ;;  %502 = vmatprep.subr.bf16.mxu0 %v561_v48 }
 0x1c6   :  { %v331_v10 = vmax.f32 %v313_v5, 0.0  ;;  %v316_v11 = vadd.f32 %v424_v51, %v315_v9 }
 0x1c7   :  { %v334_v12 = vmax.f32 %v324_v8, 0.0 }
 0x1c8   :  { %v332_v13 = vmax.f32 %v316_v11, 0.0 }
 0x1c9   :  { %v338_v14 = vpack.c.bf16 %v334_v12, %v333_v7 }
 0x1ca   :  { %v337_v15 = vpack.c.bf16 %v332_v13, %v331_v10 }
 0x1cc   :  { %503 = vmatpush3.bf16.xpose.msra.mxu0 %v336_v0 }
 0x1cd   :  { %504 = vmatprep.subr.bf16.mxu0 %v561_v48 }
 0x1d4   :  { %505 = vmatpush3.bf16.xpose.msra.mxu0 %v337_v15 }
 0x1d5   :  { %506 = vmatprep.subr.bf16.mxu0 %v561_v48 }
 0x1dc   :  { %507 = vmatpush3.bf16.xpose.msra.mxu0 %v338_v14 }
 0x1e3   :  { %509 = vmatmul.mubr.bf16.vlgmr.msra.gmra.mrb[8].mxu0 %v339_v16 }
 0x2b6   :  { %v380_v18 = vpop.f32.mrb[8].mxu0 }
 0x2b7   :  { %v381_v19 = vadd.f32 %v380_v18, %v344_v17  ;;  %v510_v20 = vpop.f32.mrb[9].mxu0 }
 0x2b8   :  { %v383_v21 = vpop.f32.mrb[10].mxu0 }
 0x2b9   :  { %v387_v22 = vrot.slane %v381_v19, 1  ;;  %v511_v23 = vpop.f32.mrb[11].mxu0 }
 0x2bb   :  { %v389_v24 = vsub.f32 %v381_v19, %v387_v22 }
 0x2bd   :  { %v390_v25 = vsub.f32 0.0, %v389_v24 }
 0x2bf   :  { %v391_v26 = vmul.f32 1.442695, %v390_v25 }
 0x2c1   :  { %532 = vpow2.f32 %v391_v26 }
 0x2cb   :  { %v533_v27 = vpop.eup %532 }
 0x2cc   :  { %v393_v28 = vadd.f32 1.0, %v533_v27 }
 0x2ce   :  { %534 = vrcp.f32 %v393_v28 }
 0x2d8   :  { %v535_v29 = vpop.eup %534 }
 0x2d9   :  { %397 = vst.msk [vmem:[#allocation2] sm:$0x1] %vm396_vm5, %v535_v29  ;;  %v398_v30 = vsub.f32 1.0, %v535_v29 }
 0x2db   :  { %399 = vst.msk [vmem:[#allocation2 + $0x1] sm:$0x1] %vm396_vm5, %v398_v30 }
 0x2dc   :  { %547 = shalt.err (!%p544_p4)
}
 0x2dd   :  { %s548_s19 = scalar_lea.hbm %s698_s7, 32 }
 0x2de   :  { %p549_p5 = scmp.ne.s32.totalorder %s698_s7, %s548_s19  ;;  %p552_p6 = scmp.lt.u32.totalorder %s548_s19, %s698_s7 }
 0x2e0   :  { %p554_p7 = pnand %p552_p6, %p549_p5 }
 0x2e2   :  { %557 = shalt.err (!%p554_p7)
}
 0x2e3   :  { %409 = dma.vmem_to_hbm [thread:$0]  %s407_s16, 32, %s698_s7, [#allocation3]  }
 0x2e4   :  { %558 = dma.done.wait [#allocation3], 32  }
 0x2e5   :  { %559 = vsyncadd [#allocation3], 4294967264 }
 0x2e6   :  { %413 = vsyncpa [#allocation3], 1 }

</bundles_post_ra>
